<compile_context>
chip_gen: v6e
topology: v6e:2x2x1
jax: 0.10.0
libtpu: 0.0.40
codegen_flags: <defaults>
</compile_context>

<pallas_src>
import functools
import math

import jax
import jax.numpy as jnp
from jax.experimental import pallas as pl
from jax.experimental.pallas import tpu as pltpu


def _build_pe(d_model: int, max_len: int = 500) -> jnp.ndarray:
    """Positional-encoding buffer, identical to the torch module's __init__."""
    position = jnp.arange(max_len, dtype=jnp.float32)[:, None]               # (S, 1)
    div_term = jnp.exp(jnp.arange(0, d_model, 2, dtype=jnp.float32)
                       * (-math.log(10000.0) / d_model))                     # (D/2,)
    ang = position * div_term                                                # (S, D/2)
    # interleave: even lanes <- sin, odd lanes <- cos  (matches pe[:,0,0::2]/[1::2])
    pe = jnp.stack([jnp.sin(ang), jnp.cos(ang)], axis=-1).reshape(max_len, 1, d_model)
    return pe.astype(jnp.float32)


def _add_kernel_fused(x_ref, pe_ref, o_ref):
    # x/pe/o tiles all share shape (ts, W): pure streaming add, no temps.
    o_ref[...] = x_ref[...] + pe_ref[...]


def _add_kernel_per_batch(x_ref, pe_ref, o_ref, *, batch, d_model):
    # x/o tiles: (ts, B*D); pe tile: (ts, D).  Broadcast over batch with B static
    # lane slices (zero-cost views; each add/store is lane-aligned when D%128==0)
    # instead of materializing a (ts, B*D) concat temp.
    pe_tile = pe_ref[...]
    for b in range(batch):
        sl = slice(b * d_model, (b + 1) * d_model)
        o_ref[:, sl] = x_ref[:, sl] + pe_tile


def positional_encoding(x: jnp.ndarray, pe: jnp.ndarray, *,
                        tile_bytes: int = 6 * 1024 * 1024,
                        donate_x: bool = False) -> jnp.ndarray:
    """x: [seq_len, batch, d_model];  pe: [max_len, 1, d_model] (torch buffer layout)."""
    S, B, D = x.shape
    max_len = pe.shape[0]
    assert S <= max_len, f"seq_len={S} exceeds positional-encoding buffer ({max_len})"

    BD = B * D
    itemsize = jnp.dtype(x.dtype).itemsize

    # Lane-dense 2-D views.  NOTE: assumes x is the standard contiguous [S, B, D]
    # layout so column b*D + d <- x[s, b, d]; otherwise the reshape copies.
    x2 = x.reshape(S, BD)
    pe2 = pe.reshape(max_len, D)
    if pe2.dtype != x.dtype:
        pe2 = pe2.astype(x.dtype)  # bf16 models: add + HBM traffic in x's dtype

    # --- pe handling -------------------------------------------------------
    # Default: stream pe at width D (only S*D extra HBM read) and do B static,
    # lane-aligned adds in the kernel.  If those per-batch slices would be
    # lane-misaligned (B > 1 and D % 128 != 0), pre-tile pe across batch once in
    # the wrapper so the kernel body is a pure, unmasked (ts, B*D) add.
    # TODO(synk): when B*D itself is not a multiple of 128, output stores are
    # masked; padding lanes in the wrapper costs more than it saves, so we don't.
    fuse_pe_over_batch = (B > 1) and (D % 128 != 0)
    if fuse_pe_over_batch:
        pe_stream = jnp.tile(pe2[:S], (1, B))            # (S, B*D), done once
        pe_width = BD
        kernel = _add_kernel_fused
    else:
        pe_stream = pe2                                  # (max_len, D), streamed
        pe_width = D
        kernel = (functools.partial(_add_kernel_per_batch, batch=B, d_model=D)
                  if B > 1 else _add_kernel_fused)

    # --- tile sizing ---------------------------------------------------------
    # Rows per packed vreg for this dtype: 8 (f32), 16 (bf16), 32 (int8/fp8).
    row_pack = 8 * max(1, 4 // itemsize)

    # Target ~tile_bytes of x per grid step, capped so the double-buffered
    # x + out + pe working set stays within a conservative scoped-VMEM budget
    # (fits v7x's 64 MiB physical VMEM with plenty of headroom).
    per_row_pipelined = 2 * (2 * BD + pe_width) * itemsize
    vmem_budget = 36 * 1024 * 1024
    ts = max(1, min(tile_bytes // max(1, BD * itemsize),
                    vmem_budget // max(1, per_row_pipelined)))
    ts = min(ts, S)

    # Keep at least 2 grid steps when S permits so v7x's second TensorCore gets work.
    if S >= 2 * row_pack:
        half = -(-S // 2)
        half = ((half + row_pack - 1) // row_pack) * row_pack
        ts = min(ts, half)

    # (8,128) rule: second-minor block dim must be a multiple of 8 or the full
    # extent; round to the full sublane pack for sub-32-bit dtypes.
    if ts < S:
        ts = max(row_pack, (ts // row_pack) * row_pack)
    if ts >= S:
        ts = S
    n_tiles = -(-S // ts)

    # --- pallas_call ---------------------------------------------------------
    x_tile_bytes = ts * BD * itemsize
    pe_tile_bytes = ts * pe_width * itemsize
    working_set = 2 * (2 * x_tile_bytes + pe_tile_bytes)   # double-buffered streams
    vmem_limit = int(min(48 * 1024 * 1024,
                         max(32 * 1024 * 1024, working_set + 8 * 1024 * 1024)))

    pe_read_bytes = min(n_tiles * ts, pe_stream.shape[0]) * pe_width * itemsize
    cost = pl.CostEstimate(
        flops=S * B * D,
        transcendentals=0,
        bytes_accessed=2 * S * BD * itemsize + pe_read_bytes,
    )

    extra = {}
    if donate_x:
        # In-place add (only safe if the caller no longer needs x).
        extra["input_output_aliases"] = {0: 0}

    out = pl.pallas_call(
        kernel,
        out_shape=jax.ShapeDtypeStruct((S, BD), x.dtype),
        grid=(n_tiles,),
        in_specs=[
            pl.BlockSpec((ts, BD), lambda i: (i, 0)),          # streamed x tiles
            pl.BlockSpec((ts, pe_width), lambda i: (i, 0)),    # streamed pe tiles
        ],
        out_specs=pl.BlockSpec((ts, BD), lambda i: (i, 0)),
        compiler_params=pltpu.CompilerParams(
            dimension_semantics=("parallel",),   # S-tiles independent -> dual-TC on v7x
            vmem_limit_bytes=vmem_limit,
        ),
        cost_estimate=cost,
        **extra,
    )(x2, pe_stream)

    return out.reshape(S, B, D)


if __name__ == "__main__":
    key = jax.random.PRNGKey(0)

    # --- Case 1: module's nominal small shape (D not a 128 multiple -> fused path)
    seq_len, batch, d_model = 20, 2, 32
    x = jax.random.normal(key, (seq_len, batch, d_model), dtype=jnp.float32)
    pe = _build_pe(d_model, max_len=500)
    ref = x + pe[:seq_len]

    # default bandwidth-sized tiling (still >= 2 tiles by construction)
    y = jax.block_until_ready(positional_encoding(x, pe))
    assert y.shape == (seq_len, batch, d_model)
    assert jnp.allclose(y, ref, atol=1e-6), "mismatch vs reference (default path)"

    # force tiny 8-row tiles to exercise the multi-step double-buffered pipeline
    y2 = jax.block_until_ready(
        positional_encoding(x, pe, tile_bytes=8 * batch * d_model * 4))
    assert jnp.allclose(y2, ref, atol=1e-6), "mismatch vs reference (tiled path)"

    # --- Case 2: D a multiple of 128 -> per-batch lane-sliced kernel path
    d2 = 128
    x_b = jax.random.normal(jax.random.PRNGKey(1), (seq_len, batch, d2),
                            dtype=jnp.float32)
    pe_b = _build_pe(d2, max_len=500)
    ref_b = x_b + pe_b[:seq_len]
    y_b = jax.block_until_ready(positional_encoding(x_b, pe_b))
    assert jnp.allclose(y_b, ref_b, atol=1e-6), "mismatch vs reference (per-batch path)"

    print("KERNEL_OK")
</pallas_src>

<mosaic_0001>
module attributes {stable_mosaic.version = 11 : i64} {
  func.func @_add_kernel_fused(%arg0: i32, %arg1: memref<16x64xf32, #tpu.memory_space<vmem>>, %arg2: memref<16x64xf32, #tpu.memory_space<vmem>>, %arg3: memref<16x64xf32, #tpu.memory_space<vmem>>) attributes {dimension_semantics = [#tpu.dimension_semantics<parallel>], iteration_bounds = array<i64: 2>, scalar_prefetch = 0 : i64, scratch_operands = 0 : i64, tpu.core_type = #tpu.core_type<tc>, window_params = [{transform_indices = @transform_0, window_bounds = array<i64: 16, 64>}, {transform_indices = @transform_1, window_bounds = array<i64: 16, 64>}, {transform_indices = @transform_2, window_bounds = array<i64: 16, 64>}]} {
    %c0 = arith.constant 0 : index
    %c0_0 = arith.constant 0 : index
    %0 = vector.load %arg1[%c0, %c0_0] : memref<16x64xf32, #tpu.memory_space<vmem>>, vector<16x64xf32>
    %c0_1 = arith.constant 0 : index
    %c0_2 = arith.constant 0 : index
    %1 = vector.load %arg2[%c0_1, %c0_2] : memref<16x64xf32, #tpu.memory_space<vmem>>, vector<16x64xf32>
    %2 = arith.addf %0, %1 : vector<16x64xf32>
    %c0_3 = arith.constant 0 : index
    %c0_4 = arith.constant 0 : index
    %3 = vector.load %arg3[%c0_3, %c0_4] : memref<16x64xf32, #tpu.memory_space<vmem>>, vector<16x64xf32>
    tpu.vector_store %arg3[%c0_3, %c0_4], %2 {strides = array<i32>} : memref<16x64xf32, #tpu.memory_space<vmem>>, vector<16x64xf32>,
    return
  }
  func.func @transform_0(%arg0: i32) -> (i32, i32) {
    %c0_i32 = arith.constant 0 : i32
    %c0_i32_0 = arith.constant 0 : i32
    return %arg0, %c0_i32 : i32, i32
  }
  func.func @transform_1(%arg0: i32) -> (i32, i32) {
    %c0_i32 = arith.constant 0 : i32
    %c0_i32_0 = arith.constant 0 : i32
    return %arg0, %c0_i32 : i32, i32
  }
  func.func @transform_2(%arg0: i32) -> (i32, i32) {
    %c0_i32 = arith.constant 0 : i32
    %c0_i32_0 = arith.constant 0 : i32
    return %arg0, %c0_i32 : i32, i32
  }
}

</mosaic_0001>

<bundles_post_ra>
// kernel: tpu_custom_call.1
= control target key start
LH: loop header
LB: loop body
LE: loop exit
PB: predicated region body
PF: predicated region fallthrough
CT: control target
= control target key end

     0   :  { %7 = vsyncpa [#allocation3], 0  ;;  %s801_s0 = inlined_call_operand.hbm [shape: f32[20,64], index: 0, kind: input, shape index: {}]   ;;  %s802_s1 = inlined_call_operand.hbm [shape: f32[20,64], index: 1, kind: input, shape index: {}]   ;;  %s803_s2 = inlined_call_operand.hbm [shape: f32[20,64], index: 2, kind: output, shape index: {}]  }
   0x1   :  { %9 = vsyncpa [#allocation3 + $0x1], 0 }
   0x2   :  { %10 = vsyncpa [#allocation6], 0 }
   0x3   :  { %12 = vsyncpa [#allocation6 + $0x1], 0 }
   0x4   :  { %13 = vsyncpa [#allocation4], 0 }
   0x5   :  { %15 = vsyncpa [#allocation4 + $0x1], 0  ;;  %s579_s9 = smov 0   ;;  %s581_s10 = smov 0  }
   0x6   :  { %s583_s11 = smov 0   ;;  %s585_s12 = smov 0  }
   0x7 LB: > { %s600_s13 = sadd.s32 4294967295, %s553_s12   ;;  %s354_s14 = sadd.s32 4294967294, %s553_s12   ;;  %s553_s12 = sphi %s585_s12, %s815_s12   ;;  %s549_s11 = sphi %s583_s11, %s814_s11   ;;  %s545_s10 = sphi %s581_s10, %s813_s10   ;;  %s541_s9 = sphi %s579_s9, %s812_s9  }
   0x8   : > { %s604_s15 = sadd.s32 1, %s553_s12   ;;  %s28_s16 = sadd.s32 1, %s549_s11 }
   0x9   : > { %s25_s17 = ssub.s32 %s553_s12, %s604_s15  ;;  %p35_p0 = scmp.ne.s32.totalorder %s549_s11, %s545_s10 }
   0xa   : > { %p26_p1 = scmp.eq.s32.totalorder %s25_s17, 0  ;;  %p36_p2 = scmp.eq.s32.totalorder %s553_s12, 0 }
   0xb   : > { %p41_p3 = scmp.ne.s32.totalorder %s545_s10, %s541_s9  ;;  %p42_p4 = scmp.eq.s32.totalorder %s600_s13, 0 }
   0xc   : > { %s616_s18 = scalar_select %p26_p1, %s549_s11, %s28_s16  }
   0xd   : > { %p618_p5 = por %p36_p2, %p35_p0  ;;  %p622_p6 = por %p42_p4, %p41_p3 }
   0xe   : > { %p91_p7 = scmp.eq.s32.totalorder %s600_s13, 1  ;;  %p97_p8 = scmp.eq.s32.totalorder %s354_s14, 1 }
   0xf   : > { %p804_p11 = scmp.ge.s32.totalorder %s553_s12, 2 }
  0x10   : > { %p627_p9 = por %p91_p7, %p35_p0  ;;  %p631_p10 = por %p97_p8, %p41_p3 }
  0x11   : > { %113 = sbr.rel (%p804_p11) target bundleno = 86 (0x56), region = 16 }
  0x12   : > { %s807_s21 = scalar_select %p627_p9, 1, 0 }
  0x13   : > { %s808_s22 = scalar_select %p631_p10, 1, 0 }
  0x16   : > { %116 = sbr.rel (!%p618_p5) target bundleno = 54 (0x36), region = 20  ;;  %s117_s23 = sand.u32 (%p618_p5), 1, %s549_s11  }
  0x17   : > { %s358_s24 = sshll.u32 (%p618_p5), %s553_s12, 1  ;;  %s357_s25 = sshll.u32 (%p618_p5), %s117_s23, 4 }
  0x18   : > { %s123_s26 = ssub.s32 (%p618_p5), 3, %s358_s24  ;;  %s645_s29 = scalar_lea.sflag (%p618_p5), [#allocation3], %s117_s23 }
  0x19   : > { %p124_p12 = scmp.lt.s32.totalorder (%p618_p5), %s123_s26, 2  ;;  %s121_s30 = scalar_lea.vmem (%p618_p5), [#allocation2], %s357_s25 }
  0x1b   : > { %s817_s26 = smov (!%p124_p12, %s123_s26), 2 }
  0x1c   : > { %s642_s27 = sshll.u32 %s817_s26, 7 }
  0x1d   : > { %s128_s28 = ssub.s32 256, %s642_s27 }
  0x1e   : > { %129 = vsyncadd %s645_s29, %s128_s28  ;;  %p360_p13 = scmp.ne.s32.totalorder %s642_s27, 0  ;;  %s384_s3 = sshll.u32 %s553_s12, 8 }
  0x1f   : > { %s653_s6 = scalar_lea.hbm %s801_s0, %s384_s3  ;;  %s134_s7 = sshll.u32 %s121_s30, 4  ;;  %s655_s7 = int_to_ptr.vmem [resolvable:$true] %s134_s7 }
  0x20   : > { %s433_s8 = scalar_lea.hbm %s653_s6, %s642_s27  ;;  %s437_s17 = scalar_lea.hbm %s801_s0, 384 }
  0x21   : > { %p434_p0 = scmp.ne.s32.totalorder %s653_s6, %s433_s8  ;;  %p438_p3 = scmp.lt.s32.totalorder %s653_s6, %s801_s0 }
  0x22   : > { %p439_p4 = scmp.lt.s32.totalorder %s437_s17, %s433_s8 }
  0x23   : > { %p435_p1 = pnand %p434_p0, %p360_p13 }
  0x24   : > { %p440_p7 = por %p439_p4, %p438_p3 }
  0x25   : > { %p436_p2 = pneg %p435_p1 }
  0x27   : > { %p441_p8 = pnand %p440_p7, %p436_p2 }
  0x29   : > { %444 = shalt.err (!%p441_p8)
}
  0x2a   : > { %s445_s25 = scalar_lea.vmem %s655_s7, %s642_s27  ;;  %s555_s26 = smov [#allocation2]  }
  0x2b   : > { %p446_p12 = scmp.ne.s32.totalorder %s655_s7, %s445_s25  ;;  %s449_s28 = sshll.u32 %s555_s26, 4  ;;  %s450_s28 = int_to_ptr.vmem [resolvable:$false] %s449_s28 }
  0x2c   : > { %s451_s30 = scalar_lea.vmem %s450_s28, 512  ;;  %p452_p11 = scmp.lt.s32.totalorder %s655_s7, %s450_s28 }
  0x2d   : > { %p447_p0 = pnand %p446_p12, %p360_p13  ;;  %p453_p10 = scmp.lt.s32.totalorder %s451_s30, %s445_s25 }
  0x2f   : > { %p448_p1 = pneg %p447_p0  ;;  %p454_p9 = por %p453_p10, %p452_p11 }
  0x31   : > { %p455_p3 = pnand %p454_p9, %p448_p1 }
  0x33   : > { %458 = shalt.err (!%p455_p3)
}
  0x34   : > { %s556_s3 = smov 128   ;;  %s557_s4 = smov 8  }
  0x35   : > { %140 = dma.hbm_to_vmem [thread:$0]  (%p360_p13), %s653_s6, %s642_s27, %s655_s7, %s645_s29, %s556_s3, %s556_s3, %s557_s4  }
  0x36 PF: > { %143 = sbr.rel (!%p618_p5) target bundleno = 86 (0x56), region = 24  ;;  %s144_s5 = sand.u32 (%p618_p5), 1, %s549_s11  }
  0x37   : > { %s365_s8 = sshll.u32 (%p618_p5), %s553_s12, 1  ;;  %s364_s14 = sshll.u32 (%p618_p5), %s144_s5, 4 }
  0x38   : > { %s150_s16 = ssub.s32 (%p618_p5), 3, %s365_s8  ;;  %s688_s24 = scalar_lea.sflag (%p618_p5), [#allocation6], %s144_s5 }
  0x39   : > { %p151_p9 = scmp.lt.s32.totalorder (%p618_p5), %s150_s16, 2  ;;  %s148_s27 = scalar_lea.vmem (%p618_p5), [#allocation5], %s364_s14 }
  0x3b   : > { %s819_s16 = smov (!%p151_p9, %s150_s16), 2 }
  0x3c   : > { %s685_s17 = sshll.u32 %s819_s16, 7 }
  0x3d   : > { %s155_s23 = ssub.s32 256, %s685_s17 }
  0x3e   : > { %156 = vsyncadd %s688_s24, %s155_s23  ;;  %p367_p5 = scmp.ne.s32.totalorder %s685_s17, 0  ;;  %s385_s19 = sshll.u32 %s553_s12, 8 }
  0x3f   : > { %s696_s7 = scalar_lea.hbm %s802_s1, %s385_s19  ;;  %s161_s25 = sshll.u32 %s148_s27, 4  ;;  %s698_s25 = int_to_ptr.vmem [resolvable:$true] %s161_s25 }
  0x40   : > { %s459_s26 = scalar_lea.hbm %s696_s7, %s685_s17  ;;  %s463_s3 = scalar_lea.hbm %s802_s1, 384 }
  0x41   : > { %p460_p10 = scmp.ne.s32.totalorder %s696_s7, %s459_s26  ;;  %p464_p2 = scmp.lt.s32.totalorder %s696_s7, %s802_s1 }
  0x42   : > { %p465_p4 = scmp.lt.s32.totalorder %s463_s3, %s459_s26 }
  0x43   : > { %p461_p11 = pnand %p460_p10, %p367_p5 }
  0x44   : > { %p466_p7 = por %p465_p4, %p464_p2 }
  0x45   : > { %p462_p13 = pneg %p461_p11 }
  0x47   : > { %p467_p8 = pnand %p466_p7, %p462_p13 }
  0x49   : > { %470 = shalt.err (!%p467_p8)
}
  0x4a   : > { %s471_s8 = scalar_lea.vmem %s698_s25, %s685_s17  ;;  %s558_s14 = smov [#allocation5]  }
  0x4b   : > { %p472_p12 = scmp.ne.s32.totalorder %s698_s25, %s471_s8  ;;  %s475_s16 = sshll.u32 %s558_s14, 4  ;;  %s476_s16 = int_to_ptr.vmem [resolvable:$false] %s475_s16 }
  0x4c   : > { %s477_s23 = scalar_lea.vmem %s476_s16, 512  ;;  %p478_p3 = scmp.lt.s32.totalorder %s698_s25, %s476_s16 }
  0x4d   : > { %p473_p0 = pnand %p472_p12, %p367_p5  ;;  %p479_p9 = scmp.lt.s32.totalorder %s477_s23, %s471_s8 }
  0x4f   : > { %p474_p1 = pneg %p473_p0  ;;  %p480_p10 = por %p479_p9, %p478_p3 }
  0x51   : > { %p481_p11 = pnand %p480_p10, %p474_p1 }
  0x53   : > { %484 = shalt.err (!%p481_p11)
}
  0x54   : > { %s559_s27 = smov 128   ;;  %s560_s19 = smov 8  }
  0x55   : > { %167 = dma.hbm_to_vmem [thread:$0]  (%p367_p5), %s696_s7, %s685_s17, %s698_s25, %s688_s24, %s559_s27, %s559_s27, %s560_s19  }
  0x56 PF: > { %p371_p13 = scmp.ge.s32.totalorder %s553_s12, 1  ;;  %p169_p2 = scmp.lt.s32.totalorder %s553_s12, 3 }
  0x58   : > { %p170_p4 = pnand %p371_p13, %p169_p2 }
  0x59   : > { %s727_s29 = sand.u32 (!%p170_p4), 1, %s545_s10  }
  0x5a   : > { %173 = sbr.rel (%p170_p4) target bundleno = 133 (0x85), region = 28  ;;  %s372_s6 = sshll.u32 (!%p170_p4), %s727_s29, 4 }
  0x5b   : > { %s176_s26 = scalar_lea.sflag (!%p170_p4), [#allocation3], %s727_s29  ;;  %s179_s28 = scalar_lea.vmem (!%p170_p4), [#allocation2], %s372_s6 }
  0x5f   : > { %528 = dma.done.wait (%p622_p6), %s176_s26, 256  }
  0x60   : > { %530 = vsyncadd (%p622_p6), %s176_s26, 4294967040  ;;  %s185_s17 = scalar_lea.sflag [#allocation6], %s727_s29  ;;  %s188_s24 = scalar_lea.vmem [#allocation5], %s372_s6 }
  0x61   : > { %532 = dma.done.wait (%p622_p6), %s185_s17, 256  }
  0x62   : > { %534 = vsyncadd (%p622_p6), %s185_s17, 4294967040  ;;  %v229_v0 = vld [vmem:[%s179_s28] sm:$0xff]  ;;  %vm235_vm0 = vcmask 523264   ;;  %v230_v2 = vld [vmem:[%s179_s28 + $0x8] sm:$0xff]  ;;  %s213_s7 = scalar_lea.vmem [#allocation7], %s372_s6  ;;  %s239_s25 = scalar_lea.sflag [#allocation4], %s727_s29 }
  0x63   : > { %v231_v1 = vld [vmem:[%s188_s24] sm:$0xff]  ;;  %v232_v4 = vld [vmem:[%s188_s24 + $0x8] sm:$0xff]  ;;  %p809_p5 = scmp.ne.s32.totalorder %s807_s21, 0 }
  0x64   : > { %v233_v3 = vadd.f32 %v231_v1, %v229_v0  ;;  %v234_v5 = vadd.f32 %v232_v4, %v230_v2  ;;  %s376_s30 = sshll.u32 (%p809_p5), %s600_s13, 1 }
  0x65   : > { %245 = sbr.rel (!%p809_p5) target bundleno = 133 (0x85), region = 40  ;;  %s247_s20 = ssub.s32 (%p809_p5), 3, %s376_s30 }
  0x66   : > { %236 = vst.msk [vmem:[%s213_s7] sm:$0xff] %vm235_vm0, %v233_v3  ;;  %237 = vst.msk [vmem:[%s213_s7 + $0x8] sm:$0xff] %vm235_vm0, %v234_v5  ;;  %p248_p6 = scmp.lt.s32.totalorder (%p809_p5), %s247_s20, 2 }
  0x6a   : > { %s821_s20 = smov (!%p248_p6, %s247_s20), 2 }
  0x6b   : > { %s744_s3 = sshll.u32 %s821_s20, 7 }
  0x6c   : > { %s252_s4 = ssub.s32 256, %s744_s3 }
  0x6d   : > { %253 = vsyncadd %s239_s25, %s252_s4  ;;  %p378_p7 = scmp.ne.s32.totalorder %s744_s3, 0  ;;  %s386_s5 = sshll.u32 %s600_s13, 8 }
  0x6e   : > { %s754_s14 = scalar_lea.hbm %s803_s2, %s386_s5  ;;  %s258_s16 = sshll.u32 %s213_s7, 4  ;;  %s756_s16 = int_to_ptr.vmem [resolvable:$true] %s258_s16 }
  0x6f   : > { %s485_s23 = scalar_lea.vmem %s756_s16, %s744_s3  ;;  %s561_s27 = smov [#allocation7]  }
  0x70   : > { %p486_p8 = scmp.ne.s32.totalorder %s756_s16, %s485_s23  ;;  %s489_s19 = sshll.u32 %s561_s27, 4  ;;  %s490_s19 = int_to_ptr.vmem [resolvable:$false] %s489_s19 }
  0x71   : > { %s491_s13 = scalar_lea.vmem %s490_s19, 512  ;;  %p492_p1 = scmp.lt.s32.totalorder %s756_s16, %s490_s19 }
  0x72   : > { %p487_p12 = pnand %p486_p8, %p378_p7  ;;  %p493_p3 = scmp.lt.s32.totalorder %s491_s13, %s485_s23 }
  0x74   : > { %p488_p0 = pneg %p487_p12  ;;  %p494_p9 = por %p493_p3, %p492_p1 }
  0x76   : > { %p495_p10 = pnand %p494_p9, %p488_p0 }
  0x78   : > { %498 = shalt.err (!%p495_p10)
}
  0x79   : > { %s499_s6 = scalar_lea.hbm %s754_s14, %s744_s3  ;;  %s503_s17 = scalar_lea.hbm %s803_s2, 384 }
  0x7a   : > { %p500_p11 = scmp.ne.s32.totalorder %s754_s14, %s499_s6  ;;  %p504_p4 = scmp.lt.s32.totalorder %s754_s14, %s803_s2 }
  0x7b   : > { %p505_p5 = scmp.lt.s32.totalorder %s503_s17, %s499_s6 }
  0x7c   : > { %p501_p13 = pnand %p500_p11, %p378_p7 }
  0x7d   : > { %p506_p6 = por %p505_p5, %p504_p4 }
  0x7e   : > { %p502_p2 = pneg %p501_p13 }
  0x80   : > { %p507_p8 = pnand %p506_p6, %p502_p2 }
  0x82   : > { %510 = shalt.err (!%p507_p8)
}
  0x83   : > { %s562_s30 = smov 128   ;;  %s563_s20 = smov 8  }
  0x84   : > { %264 = dma.vmem_to_hbm [thread:$0]  (%p378_p7), %s756_s16, %s744_s3, %s754_s14, %s239_s25, %s562_s30, %s562_s30, %s563_s20  }
  0x85 PF: > { %s273_s4 = sand.u32 1, %s541_s9   ;;  %p810_p12 = scmp.ne.s32.totalorder %s808_s22, 0 }
  0x86   : > { %p811_p0 = scmp.ge.s32.totalorder %s553_s12, 2  ;;  %s274_s5 = scalar_lea.sflag [#allocation4], %s273_s4 }
  0x88   : > { %p391_p1 = pnand %p811_p0, %p810_p12 }
  0x8a   : > { %p392_p3 = pneg %p391_p1 }
  0x8c   : > { %536 = dma.done.wait (%p392_p3), %s274_s5, 256  }
  0x8d   : > { %538 = vsyncadd (%p392_p3), %s274_s5, 4294967040  ;;  %p18_p9 = scmp.ge.s32.totalorder %s604_s15, 4   ;;  %s812_s9 = smov %s545_s10 }
  0x8e   : > { %s813_s10 = smov %s549_s11  ;;  %s814_s11 = smov %s616_s18 }
  0x8f   : > { %s815_s12 = smov %s604_s15  ;;  %20 = sbr.rel (!%p18_p9) target bundleno = 7 (0x7), region = 86 }
  0x94   :  { %279 = vsyncpa [#allocation3], 1 }
  0x95   :  { %281 = vsyncpa [#allocation3 + $0x1], 1 }
  0x96   :  { %282 = vsyncpa [#allocation6], 1 }
  0x97   :  { %284 = vsyncpa [#allocation6 + $0x1], 1 }
  0x98   :  { %285 = vsyncpa [#allocation4], 1 }
  0x99   :  { %287 = vsyncpa [#allocation4 + $0x1], 1 }

</bundles_post_ra>
